<compile_context>
chip_gen: v6e
topology: v6e:2x2x1
jax: 0.10.0
libtpu: 0.0.40
codegen_flags: <defaults>
</compile_context>

<pallas_src>
import jax
import jax.numpy as jnp
from jax.experimental import pallas as pl
from jax.experimental.pallas import tpu as pltpu

H1 = 8 + 64      # fused layer-1 width (ctx_encoder2 out ++ fc1 out)
H2 = 96          # fc2 out
H3 = 64          # fc3 out
HP = 128         # padded lane width used for every hidden layer

MIN_TILE = 16    # batch-tile granularity (sublane-friendly for f32 and bf16)


def _round_up(v, m):
    return ((v + m - 1) // m) * m


# ----------------------------- Pallas kernel ---------------------------------
def net_kernel(x_ref, w1_ref, wh_ref, b_ref, out_ref):
    b = b_ref[...]                                           # (4, HP) f32

    # layer 1: fused block-diagonal [ctx_encoder2 | fc1] + relu, in f32 (K tiny)
    h = jnp.dot(x_ref[...], w1_ref[...], preferred_element_type=jnp.float32)
    h = jnp.maximum(h + b[0:1, :], 0.0)

    # fc2 + relu   (B,128)@(128,128); rows >= 72 / cols >= 96 are zero
    h = jnp.dot(h.astype(jnp.bfloat16), wh_ref[0],
                preferred_element_type=jnp.float32)
    h = jnp.maximum(h + b[1:2, :], 0.0)

    # fc3 + relu
    h = jnp.dot(h.astype(jnp.bfloat16), wh_ref[1],
                preferred_element_type=jnp.float32)
    h = jnp.maximum(h + b[2:3, :], 0.0)

    # out (no activation): compute the padded 128-wide result, store only the
    # useful action_count columns (out_ref is already that narrow).
    r = jnp.dot(h.astype(jnp.bfloat16), wh_ref[2],
                preferred_element_type=jnp.float32) + b[3:4, :]
    out_ref[...] = r[:, :out_ref.shape[1]]


# ------------------------------ wrapper ---------------------------------------
def net_forward(x, packed, action_count, *, tb=4096):
    """x: (batch, contc + disc_rep + 6) float32 -> (batch, action_count) f32."""
    w1, w_hid, b_all = packed
    batch, feat = x.shape

    # --- batch-tile selection -------------------------------------------------
    tb = min(tb, batch)                                  # never exceed the array
    if batch >= 2 * MIN_TILE:
        # give the grid >= 2 steps so v7x's two TensorCores both get work
        tb = min(tb, _round_up(pl.cdiv(batch, 2), MIN_TILE))
    if tb < batch:
        tb = max(8, (tb // 8) * 8)                       # sublane-align partial tiles
    nb = pl.cdiv(batch, tb)

    return pl.pallas_call(
        net_kernel,
        out_shape=jax.ShapeDtypeStruct((batch, action_count), jnp.float32),
        grid=(nb,),
        in_specs=[
            pl.BlockSpec((tb, feat), lambda i: (i, 0)),        # activations: tiled
            pl.BlockSpec((feat, HP), lambda i: (0, 0)),        # weights: resident
            pl.BlockSpec((3, HP, HP), lambda i: (0, 0, 0)),
            pl.BlockSpec((4, HP), lambda i: (0, 0)),
        ],
        out_specs=pl.BlockSpec((tb, action_count), lambda i: (i, 0)),
        compiler_params=pltpu.CompilerParams(
            dimension_semantics=("parallel",)),                # megacore / dual-TC
    )(x, w1, w_hid, b_all)


# -------------------------- deterministic params ------------------------------
def init_params(key, contc, disc_rep, action_count):
    """nn.Linear-like init: weights ~ N(0, 0.1), biases ~ U(-1/sqrt(fan_in), ...).
    Weights stored as (in_features, out_features)."""
    c1 = contc + disc_rep
    ks = jax.random.split(key, 10)

    def w(k, fi, fo):
        return (0.1 * jax.random.normal(k, (fi, fo))).astype(jnp.float32)

    def b(k, fi, fo):
        bound = 1.0 / (fi ** 0.5)
        return jax.random.uniform(k, (fo,), jnp.float32, -bound, bound)

    return {
        "w_ctx": w(ks[0], c1, 8),  "b_ctx": b(ks[1], c1, 8),
        "w_fc1": w(ks[2], 6, 64),  "b_fc1": b(ks[3], 6, 64),
        "w_fc2": w(ks[4], H1, H2), "b_fc2": b(ks[5], H1, H2),
        "w_fc3": w(ks[6], H2, H3), "b_fc3": b(ks[7], H2, H3),
        "w_out": w(ks[8], H3, action_count),
        "b_out": b(ks[9], H3, action_count),
    }


def pack_params(params, contc, disc_rep, action_count):
    """Fuse layer 1 into a block-diagonal matrix, zero-pad widths to 128 lanes,
    and pack into: W1 (F,128) f32, W_hid (3,128,128) bf16, b_all (4,128) f32."""
    c1 = contc + disc_rep
    feat = c1 + 6

    w1 = jnp.zeros((feat, HP), jnp.float32)
    w1 = w1.at[:c1, :8].set(params["w_ctx"])          # slice1 -> enc1 (cols 0:8)
    w1 = w1.at[c1:, 8:H1].set(params["w_fc1"])        # slice3 -> enc3 (cols 8:72)
    b1 = jnp.zeros((HP,), jnp.float32)
    b1 = b1.at[:8].set(params["b_ctx"]).at[8:H1].set(params["b_fc1"])

    w2 = jnp.zeros((HP, HP), jnp.float32).at[:H1, :H2].set(params["w_fc2"])
    b2 = jnp.zeros((HP,), jnp.float32).at[:H2].set(params["b_fc2"])

    w3 = jnp.zeros((HP, HP), jnp.float32).at[:H2, :H3].set(params["w_fc3"])
    b3 = jnp.zeros((HP,), jnp.float32).at[:H3].set(params["b_fc3"])

    wo = jnp.zeros((HP, HP), jnp.float32).at[:H3, :action_count].set(params["w_out"])
    bo = jnp.zeros((HP,), jnp.float32).at[:action_count].set(params["b_out"])

    w_hid = jnp.stack([w2, w3, wo]).astype(jnp.bfloat16)    # (3, 128, 128) bf16
    b_all = jnp.stack([b1, b2, b3, bo])                     # (4, 128) f32
    return w1, w_hid, b_all                                 # layer 1 stays f32


# ------------------------------ reference -------------------------------------
def net_forward_ref(x, params, contc, disc_rep):
    c1 = contc + disc_rep
    s1 = x[:, :c1]
    s3 = x[:, c1:c1 + 6]
    h1 = jax.nn.relu(s1 @ params["w_ctx"] + params["b_ctx"])
    h3 = jax.nn.relu(s3 @ params["w_fc1"] + params["b_fc1"])
    h = jnp.concatenate([h1, h3], axis=1)
    h = jax.nn.relu(h @ params["w_fc2"] + params["b_fc2"])
    h = jax.nn.relu(h @ params["w_fc3"] + params["b_fc3"])
    return h @ params["w_out"] + params["b_out"]


if __name__ == "__main__":
    # Small shapes consistent with the module's forward:
    batch = 8
    contc = 4
    disc_rep = 4                       # slice1 width = contc + disc_rep = 8
    action_count = 5
    in_features = contc + disc_rep + 6  # 14

    key = jax.random.PRNGKey(0)
    k_x, k_p = jax.random.split(key)
    x = jax.random.normal(k_x, (batch, in_features), dtype=jnp.float32)

    params = init_params(k_p, contc, disc_rep, action_count)
    packed = pack_params(params, contc, disc_rep, action_count)

    out = net_forward(x, packed, action_count)
    out = jax.block_until_ready(out)

    ref = net_forward_ref(x, params, contc, disc_rep)
    assert out.shape == (batch, action_count)
    # bf16 hidden-layer weights with f32 accumulate -> loose tolerance vs f32 ref.
    max_err = float(jnp.max(jnp.abs(out - ref)))
    assert jnp.allclose(out, ref, atol=5e-2, rtol=5e-2), max_err

    print("KERNEL_OK")
</pallas_src>

<mosaic_0001>
module attributes {stable_mosaic.version = 11 : i64} {
  func.func @net_kernel(%arg0: i32, %arg1: memref<8x14xf32, #tpu.memory_space<vmem>>, %arg2: memref<14x128xf32, #tpu.memory_space<vmem>>, %arg3: memref<3x128x128xbf16, #tpu.memory_space<vmem>>, %arg4: memref<4x128xf32, #tpu.memory_space<vmem>>, %arg5: memref<8x5xf32, #tpu.memory_space<vmem>>) attributes {dimension_semantics = [#tpu.dimension_semantics<parallel>], iteration_bounds = array<i64: 1>, scalar_prefetch = 0 : i64, scratch_operands = 0 : i64, tpu.core_type = #tpu.core_type<tc>, window_params = [{transform_indices = @transform_0, window_bounds = array<i64: 8, 14>}, {pipeline_mode = #tpu.pipeline_mode<synchronous>, transform_indices = @transform_1, window_bounds = array<i64: 14, 128>}, {pipeline_mode = #tpu.pipeline_mode<synchronous>, transform_indices = @transform_2, window_bounds = array<i64: 3, 128, 128>}, {pipeline_mode = #tpu.pipeline_mode<synchronous>, transform_indices = @transform_3, window_bounds = array<i64: 4, 128>}, {transform_indices = @transform_4, window_bounds = array<i64: 8, 5>}]} {
    %c0 = arith.constant 0 : index
    %c0_0 = arith.constant 0 : index
    %0 = vector.load %arg4[%c0, %c0_0] : memref<4x128xf32, #tpu.memory_space<vmem>>, vector<4x128xf32>
    %c0_1 = arith.constant 0 : index
    %c0_2 = arith.constant 0 : index
    %1 = vector.load %arg1[%c0_1, %c0_2] : memref<8x14xf32, #tpu.memory_space<vmem>>, vector<8x14xf32>
    %c0_3 = arith.constant 0 : index
    %c0_4 = arith.constant 0 : index
    %2 = vector.load %arg2[%c0_3, %c0_4] : memref<14x128xf32, #tpu.memory_space<vmem>>, vector<14x128xf32>
    %cst = arith.constant dense<0.000000e+00> : vector<8x128xf32>
    %3 = tpu.matmul %1, %2, %cst {dimension_numbers = #tpu.dot_dimension_numbers<[1], [0], [0], [1], [0, 0, 1, 1], [], []>} : vector<8x14xf32>, vector<14x128xf32>, vector<8x128xf32> -> vector<8x128xf32>
    %4 = vector.extract_strided_slice %0 {offsets = [0, 0], sizes = [1, 128], strides = [1, 1]} : vector<4x128xf32> to vector<1x128xf32>
    %5 = vector.broadcast %4 : vector<1x128xf32> to vector<8x128xf32>
    %6 = arith.addf %3, %5 : vector<8x128xf32>
    %cst_5 = arith.constant 0.000000e+00 : f32
    %7 = vector.broadcast %cst_5 : f32 to vector<8x128xf32>
    %8 = arith.maximumf %6, %7 : vector<8x128xf32>
    %9 = arith.truncf %8 : vector<8x128xf32> to vector<8x128xbf16>
    %c0_6 = arith.constant 0 : index
    %c0_7 = arith.constant 0 : index
    %c0_8 = arith.constant 0 : index
    %10 = vector.load %arg3[%c0_6, %c0_7, %c0_8] : memref<3x128x128xbf16, #tpu.memory_space<vmem>>, vector<1x128x128xbf16>
    %11 = vector.shape_cast %10 : vector<1x128x128xbf16> to vector<128x128xbf16>
    %cst_9 = arith.constant dense<0.000000e+00> : vector<8x128xf32>
    %12 = tpu.matmul %9, %11, %cst_9 {dimension_numbers = #tpu.dot_dimension_numbers<[1], [0], [0], [1], [0, 0, 1, 1], [], []>} : vector<8x128xbf16>, vector<128x128xbf16>, vector<8x128xf32> -> vector<8x128xf32>
    %13 = vector.extract_strided_slice %0 {offsets = [1, 0], sizes = [1, 128], strides = [1, 1]} : vector<4x128xf32> to vector<1x128xf32>
    %14 = vector.broadcast %13 : vector<1x128xf32> to vector<8x128xf32>
    %15 = arith.addf %12, %14 : vector<8x128xf32>
    %cst_10 = arith.constant 0.000000e+00 : f32
    %16 = vector.broadcast %cst_10 : f32 to vector<8x128xf32>
    %17 = arith.maximumf %15, %16 : vector<8x128xf32>
    %18 = arith.truncf %17 : vector<8x128xf32> to vector<8x128xbf16>
    %c1 = arith.constant 1 : index
    %c0_11 = arith.constant 0 : index
    %c0_12 = arith.constant 0 : index
    %19 = vector.load %arg3[%c1, %c0_11, %c0_12] : memref<3x128x128xbf16, #tpu.memory_space<vmem>>, vector<1x128x128xbf16>
    %20 = vector.shape_cast %19 : vector<1x128x128xbf16> to vector<128x128xbf16>
    %cst_13 = arith.constant dense<0.000000e+00> : vector<8x128xf32>
    %21 = tpu.matmul %18, %20, %cst_13 {dimension_numbers = #tpu.dot_dimension_numbers<[1], [0], [0], [1], [0, 0, 1, 1], [], []>} : vector<8x128xbf16>, vector<128x128xbf16>, vector<8x128xf32> -> vector<8x128xf32>
    %22 = vector.extract_strided_slice %0 {offsets = [2, 0], sizes = [1, 128], strides = [1, 1]} : vector<4x128xf32> to vector<1x128xf32>
    %23 = vector.broadcast %22 : vector<1x128xf32> to vector<8x128xf32>
    %24 = arith.addf %21, %23 : vector<8x128xf32>
    %cst_14 = arith.constant 0.000000e+00 : f32
    %25 = vector.broadcast %cst_14 : f32 to vector<8x128xf32>
    %26 = arith.maximumf %24, %25 : vector<8x128xf32>
    %27 = arith.truncf %26 : vector<8x128xf32> to vector<8x128xbf16>
    %c2 = arith.constant 2 : index
    %c0_15 = arith.constant 0 : index
    %c0_16 = arith.constant 0 : index
    %28 = vector.load %arg3[%c2, %c0_15, %c0_16] : memref<3x128x128xbf16, #tpu.memory_space<vmem>>, vector<1x128x128xbf16>
    %29 = vector.shape_cast %28 : vector<1x128x128xbf16> to vector<128x128xbf16>
    %cst_17 = arith.constant dense<0.000000e+00> : vector<8x128xf32>
    %30 = tpu.matmul %27, %29, %cst_17 {dimension_numbers = #tpu.dot_dimension_numbers<[1], [0], [0], [1], [0, 0, 1, 1], [], []>} : vector<8x128xbf16>, vector<128x128xbf16>, vector<8x128xf32> -> vector<8x128xf32>
    %31 = vector.extract_strided_slice %0 {offsets = [3, 0], sizes = [1, 128], strides = [1, 1]} : vector<4x128xf32> to vector<1x128xf32>
    %32 = vector.broadcast %31 : vector<1x128xf32> to vector<8x128xf32>
    %33 = arith.addf %30, %32 : vector<8x128xf32>
    %34 = vector.extract_strided_slice %33 {offsets = [0, 0], sizes = [8, 5], strides = [1, 1]} : vector<8x128xf32> to vector<8x5xf32>
    %c0_18 = arith.constant 0 : index
    %c0_19 = arith.constant 0 : index
    %35 = vector.load %arg5[%c0_18, %c0_19] : memref<8x5xf32, #tpu.memory_space<vmem>>, vector<8x5xf32>
    tpu.vector_store %arg5[%c0_18, %c0_19], %34 {strides = array<i32>} : memref<8x5xf32, #tpu.memory_space<vmem>>, vector<8x5xf32>,
    return
  }
  func.func @transform_0(%arg0: i32) -> (i32, i32) {
    %c0_i32 = arith.constant 0 : i32
    %c0_i32_0 = arith.constant 0 : i32
    return %arg0, %c0_i32 : i32, i32
  }
  func.func @transform_1(%arg0: i32) -> (i32, i32) {
    %c0_i32 = arith.constant 0 : i32
    %c0_i32_0 = arith.constant 0 : i32
    %c0_i32_1 = arith.constant 0 : i32
    return %c0_i32, %c0_i32_0 : i32, i32
  }
  func.func @transform_2(%arg0: i32) -> (i32, i32, i32) {
    %c0_i32 = arith.constant 0 : i32
    %c0_i32_0 = arith.constant 0 : i32
    %c0_i32_1 = arith.constant 0 : i32
    %c0_i32_2 = arith.constant 0 : i32
    return %c0_i32, %c0_i32_0, %c0_i32_1 : i32, i32, i32
  }
  func.func @transform_3(%arg0: i32) -> (i32, i32) {
    %c0_i32 = arith.constant 0 : i32
    %c0_i32_0 = arith.constant 0 : i32
    %c0_i32_1 = arith.constant 0 : i32
    return %c0_i32, %c0_i32_0 : i32, i32
  }
  func.func @transform_4(%arg0: i32) -> (i32, i32) {
    %c0_i32 = arith.constant 0 : i32
    %c0_i32_0 = arith.constant 0 : i32
    return %arg0, %c0_i32 : i32, i32
  }
}

</mosaic_0001>

<bundles_post_ra>
// kernel: tpu_custom_call.1
= control target key start
LH: loop header
LB: loop body
LE: loop exit
PB: predicated region body
PF: predicated region fallthrough
CT: control target
= control target key end

     0   :  { %9 = vsyncpa [#allocation3], 0  ;;  %s821_s0 = inlined_call_operand.hbm [shape: f32[8,14], index: 0, kind: input, shape index: {}]   ;;  %s822_s1 = inlined_call_operand.hbm [shape: f32[14,128], index: 1, kind: input, shape index: {}]   ;;  %s823_s2 = inlined_call_operand.hbm [shape: bf16[3,128,128], index: 2, kind: input, shape index: {}]   ;;  %s824_s3 = inlined_call_operand.vmem [shape: f32[4,128], index: 3, kind: input, shape index: {}]   ;;  %s825_s4 = inlined_call_operand.hbm [shape: f32[8,5], index: 4, kind: output, shape index: {}]  }
   0x1   :  { %10 = vsyncpa [#allocation6], 0 }
   0x2   :  { %11 = vsyncpa [#allocation4], 0  ;;  %s737_s15 = smov [#allocation5]  }
   0x3   :  { %s27_s16 = sshll.u32 %s737_s15, 4  ;;  %s28_s16 = int_to_ptr.vmem [resolvable:$true] %s27_s16 }
   0x4   :  { %s659_s17 = scalar_lea.vmem %s28_s16, 256  ;;  %p664_p1 = scmp.lt.s32.totalorder %s28_s16, %s28_s16 }
   0x5   :  { %p660_p0 = scmp.ne.s32.totalorder %s28_s16, %s659_s17  ;;  %p665_p2 = scmp.lt.s32.totalorder %s659_s17, %s659_s17 }
   0x7   :  { %p666_p3 = por %p665_p2, %p664_p1 }
   0x9   :  { %p667_p4 = pnand %p666_p3, %p660_p0 }
   0xb   :  { %670 = shalt.err (!%p667_p4)
}
   0xc   :  { %s738_s18 = smov 128   ;;  %s739_s19 = smov 8  }
   0xd   :  { %33 = dma.hbm_to_vmem [thread:$0]  %s822_s1, 256, %s28_s16, [#allocation6], %s738_s18, %s738_s18, %s739_s19  }
   0xe   :  { %s740_s22 = smov [#allocation2]   ;;  %s741_s24 = smov [#allocation7]  }
   0xf   :  { %s18_s23 = sshll.u32 %s740_s22, 4  ;;  %s39_s25 = sshll.u32 %s741_s24, 4  ;;  %s19_s23 = int_to_ptr.vmem [resolvable:$true] %s18_s23  ;;  %s40_s25 = int_to_ptr.vmem [resolvable:$true] %s39_s25 }
  0x10   :  { %s679_s26 = scalar_lea.vmem %s19_s23, 128  ;;  %p684_p6 = scmp.lt.s32.totalorder %s19_s23, %s19_s23 }
  0x11   :  { %p680_p5 = scmp.ne.s32.totalorder %s19_s23, %s679_s26  ;;  %p685_p7 = scmp.lt.s32.totalorder %s679_s26, %s679_s26 }
  0x13   :  { %p686_p8 = por %p685_p7, %p684_p6 }
  0x15   :  { %p687_p9 = pnand %p686_p8, %p680_p5 }
  0x17   :  { %690 = shalt.err (!%p687_p9)
}
  0x18   :  { %21 = dma.hbm_to_vmem [thread:$0]  %s821_s0, 128, %s19_s23, [#allocation3]  }
  0x19   :  { %s699_s29 = scalar_lea.vmem %s40_s25, 3072  ;;  %p704_p11 = scmp.lt.s32.totalorder %s40_s25, %s40_s25 }
  0x1a   :  { %p700_p10 = scmp.ne.s32.totalorder %s40_s25, %s699_s29  ;;  %p705_p12 = scmp.lt.s32.totalorder %s699_s29, %s699_s29 }
  0x1c   :  { %p706_p13 = por %p705_p12, %p704_p11 }
  0x1e   :  { %p707_p0 = pnand %p706_p13, %p700_p10 }
  0x20   :  { %710 = shalt.err (!%p707_p0)
}
  0x21   :  { %s742_s1 = smov 64   ;;  %s743_s30 = smov 4  }
  0x22   :  { %45 = dma.hbm_to_vmem [thread:$0]  %s823_s2, 3072, %s40_s25, [#allocation6], %s742_s1, %s742_s1, %s743_s30  }
  0x23   :  { %731 = dma.done.wait [#allocation3], 128  }
  0x24   :  { %732 = vsyncadd [#allocation3], 4294967168 }
  0x25   :  { %733 = dma.done.wait [#allocation6], 3328  }
  0x26   :  { %734 = vsyncadd [#allocation6], 4294963968  ;;  %v744_v0 = vmov 0.0   ;;  %vm745_vm0 = vmmov 0   ;;  %vm70_vm1 = vcmask 1045504   ;;  %v60_v2 = vld [vmem:[#allocation5] sm:$0xff]  ;;  %v62_v18 = vlaneseq }
  0x27   :  { %550 = vmatprep.subr.mxu0 %v744_v0  ;;  %554 = vmatprep.mubr.msk.f32.mxu0 %vm745_vm0, %v744_v0  ;;  %v61_v1 = vld [vmem:[#allocation5 + $0x8] sm:$0x3f]  ;;  %v59_v3 = vld [vmem:[#allocation2] sm:$0xff]  ;;  %vm66_vm2 = vcmask 113664   ;;  %v628_v5 = vld [vmem:[#allocation7 + $0x30] sm:$0xff]   ;;  %vm476_vm3 = vcmask 39936  }
  0x28   :  { %557 = vmatprep.subr.bf16.mxu1 %v744_v0  ;;  %573 = vmatprep.mubr.msk.bf16.mxu1 %vm745_vm0, %v744_v0  ;;  %v627_v4 = vld [vmem:[#allocation7 + $0x38] sm:$0xff]   ;;  %v629_v6 = vld [vmem:[#allocation7 + $0x28] sm:$0xff]   ;;  %v630_v7 = vld [vmem:[#allocation7 + $0x20] sm:$0xff]   ;;  %v63_v19 = vshrl.u32 %v62_v18, 7 }
  0x29   :  { %551 = vmatpush3.msk.msra.mxu0 %vm70_vm1, %v61_v1  ;;  %558 = vmatpush3.bf16.msra.mxu1 %v627_v4  ;;  %v631_v8 = vld [vmem:[#allocation7 + $0x18] sm:$0xff]   ;;  %v632_v9 = vld [vmem:[#allocation7 + $0x10] sm:$0xff]   ;;  %v633_v10 = vld [vmem:[#allocation7 + $0x8] sm:$0xff]  }
  0x2a   :  { %552 = vmatprep.subr.mxu0 %v744_v0  ;;  %559 = vmatprep.subr.bf16.mxu1 %v744_v0  ;;  %v634_v11 = vld [vmem:[#allocation7] sm:$0xff]   ;;  %v635_v12 = vld [vmem:[#allocation7 + $0x78] sm:$0xff]   ;;  %v636_v13 = vld [vmem:[#allocation7 + $0x70] sm:$0xff]   ;;  %v64_v20 = vsub.s32 0, %v63_v19  ;;  %v164_v36 = vsub.s32 1, %v63_v19  ;;  %v275_v47 = vsub.s32 2, %v63_v19 }
  0x2b   :  { %553 = vmatpush3.msra.mxu0 %v60_v2  ;;  %v637_v14 = vld [vmem:[#allocation7 + $0x68] sm:$0xff]   ;;  %v638_v15 = vld [vmem:[#allocation7 + $0x60] sm:$0xff]   ;;  %v639_v16 = vld [vmem:[#allocation7 + $0x58] sm:$0xff]   ;;  %v386_v56 = vsub.s32 3, %v63_v19 }
  0x2c   :  { %555 = vmatmul.mubr.msk.f32.vlgmr.msra.gmra.mxu0 %vm66_vm2, %v59_v3  ;;  %577 = vmatprep.subr.bf16.mxu0 %v744_v0  ;;  %v640_v17 = vld [vmem:[#allocation7 + $0x50] sm:$0xff]   ;;  %v58_v21 = vld [vmem:[%s824_s3] sm:$0xf]  ;;  %v642_v29 = vld [vmem:[#allocation7 + $0x40] sm:$0xff]   ;;  %s746_s3 = smov [#allocation8]  }
  0x2d   :  { %593 = vmatprep.mubr.msk.bf16.mxu0 %vm745_vm0, %v744_v0  ;;  %560 = vmatpush3.bf16.msra.mxu1 %v628_v5  ;;  %v65_v22 = vrot.slane %v58_v21, %v64_v20  ;;  %v641_v28 = vld [vmem:[#allocation7 + $0x48] sm:$0xff]   ;;  %v643_v30 = vld [vmem:[#allocation7 + $0xb8] sm:$0xff]   ;;  %v644_v31 = vld [vmem:[#allocation7 + $0xb0] sm:$0xff]   ;;  %v165_v37 = vrot.slane %v58_v21, %v164_v36  ;;  %v276_v48 = vrot.slane %v58_v21, %v275_v47  ;;  %s484_s7 = sshll.u32 %s746_s3, 4  ;;  %s485_s7 = int_to_ptr.vmem [resolvable:$true] %s484_s7 }
  0x2e   :  { %561 = vmatprep.subr.bf16.mxu1 %v744_v0  ;;  %578 = vmatpush3.bf16.msra.mxu0 %v635_v12  ;;  %v645_v32 = vld [vmem:[#allocation7 + $0xa8] sm:$0xff]   ;;  %v646_v33 = vld [vmem:[#allocation7 + $0xa0] sm:$0xff]   ;;  %v647_v34 = vld [vmem:[#allocation7 + $0x98] sm:$0xff]   ;;  %v387_v57 = vrot.slane %v58_v21, %v386_v56  ;;  %s711_s8 = scalar_lea.vmem %s485_s7, 128  ;;  %p716_p2 = scmp.lt.s32.totalorder %s485_s7, %s485_s7 }
  0x2f   :  { %579 = vmatprep.subr.bf16.mxu0 %v744_v0  ;;  %v648_v35 = vld [vmem:[#allocation7 + $0x90] sm:$0xff]   ;;  %v649_v45 = vld [vmem:[#allocation7 + $0x88] sm:$0xff]   ;;  %v650_v46 = vld [vmem:[#allocation7 + $0x80] sm:$0xff]   ;;  %p712_p1 = scmp.ne.s32.totalorder %s485_s7, %s711_s8  ;;  %p717_p3 = scmp.lt.s32.totalorder %s711_s8, %s711_s8 }
  0x31   :  { %562 = vmatpush3.bf16.msra.mxu1 %v629_v6  ;;  %p718_p4 = por %p717_p3, %p716_p2 }
  0x32   :  { %563 = vmatprep.subr.bf16.mxu1 %v744_v0  ;;  %580 = vmatpush3.bf16.msra.mxu0 %v636_v13 }
  0x33   :  { %581 = vmatprep.subr.bf16.mxu0 %v744_v0  ;;  %p719_p5 = pnand %p718_p4, %p712_p1 }
  0x35   :  { %564 = vmatpush3.bf16.msra.mxu1 %v630_v7 }
  0x36   :  { %565 = vmatprep.subr.bf16.mxu1 %v744_v0  ;;  %582 = vmatpush3.bf16.msra.mxu0 %v637_v14 }
  0x37   :  { %583 = vmatprep.subr.bf16.mxu0 %v744_v0 }
  0x39   :  { %566 = vmatpush3.bf16.msra.mxu1 %v631_v8 }
  0x3a   :  { %567 = vmatprep.subr.bf16.mxu1 %v744_v0  ;;  %584 = vmatpush3.bf16.msra.mxu0 %v638_v15 }
  0x3b   :  { %585 = vmatprep.subr.bf16.mxu0 %v744_v0 }
  0x3d   :  { %568 = vmatpush3.bf16.msra.mxu1 %v632_v9 }
  0x3e   :  { %569 = vmatprep.subr.bf16.mxu1 %v744_v0  ;;  %586 = vmatpush3.bf16.msra.mxu0 %v639_v16 }
  0x3f   :  { %587 = vmatprep.subr.bf16.mxu0 %v744_v0 }
  0x41   :  { %570 = vmatpush3.bf16.msra.mxu1 %v633_v10 }
  0x42   :  { %571 = vmatprep.subr.bf16.mxu1 %v744_v0  ;;  %588 = vmatpush3.bf16.msra.mxu0 %v640_v17 }
  0x43   :  { %589 = vmatprep.subr.bf16.mxu0 %v744_v0 }
  0x45   :  { %572 = vmatpush3.bf16.msra.mxu1 %v634_v11 }
  0x46   :  { %597 = vmatprep.subr.bf16.mxu1 %v744_v0  ;;  %590 = vmatpush3.bf16.msra.mxu0 %v641_v28 }
  0x47   :  { %591 = vmatprep.subr.bf16.mxu0 %v744_v0 }
  0x4a   :  { %592 = vmatpush3.bf16.msra.mxu0 %v642_v29 }
  0xec   :  { %v140_v23 = vpop.f32.mrf.mxu0 }
  0xed   :  { %v141_v24 = vadd.f32 %v140_v23, %v65_v22 }
  0xee   :  { %v556_v25 = vpop.f32.mrf.mxu0 }
  0xef   :  { %v144_v26 = vmax.f32 %v141_v24, 0.0 }
  0xf1   :  { %v145_v27 = vpack.c.bf16 %v144_v26, %v144_v26 }
  0xf3   :  { %574 = vmatmul.mubr.bf16.vlgmr.msra.gmra.mxu1 %v145_v27 }
  0xf4   :  { %613 = vmatprep.mubr.msk.bf16.mxu1 %vm745_vm0, %v744_v0  ;;  %598 = vmatpush3.bf16.msra.mxu1 %v643_v30 }
  0xf5   :  { %599 = vmatprep.subr.bf16.mxu1 %v744_v0 }
  0xf8   :  { %600 = vmatpush3.bf16.msra.mxu1 %v644_v31 }
  0xf9   :  { %601 = vmatprep.subr.bf16.mxu1 %v744_v0 }
  0xfc   :  { %602 = vmatpush3.bf16.msra.mxu1 %v645_v32 }
  0xfd   :  { %603 = vmatprep.subr.bf16.mxu1 %v744_v0 }
 0x100   :  { %604 = vmatpush3.bf16.msra.mxu1 %v646_v33 }
 0x101   :  { %605 = vmatprep.subr.bf16.mxu1 %v744_v0 }
 0x104   :  { %606 = vmatpush3.bf16.msra.mxu1 %v647_v34 }
 0x105   :  { %607 = vmatprep.subr.bf16.mxu1 %v744_v0 }
 0x108   :  { %608 = vmatpush3.bf16.msra.mxu1 %v648_v35 }
 0x109   :  { %609 = vmatprep.subr.bf16.mxu1 %v744_v0 }
 0x10c   :  { %610 = vmatpush3.bf16.msra.mxu1 %v649_v45 }
 0x10d   :  { %611 = vmatprep.subr.bf16.mxu1 %v744_v0 }
 0x110   :  { %612 = vmatpush3.bf16.msra.mxu1 %v650_v46 }
 0x1b3   :  { %v248_v38 = vpop.f32.mrf.mxu1 }
 0x1b4   :  { %v249_v39 = vadd.f32 %v248_v38, %v165_v37 }
 0x1b5   :  { %v575_v40 = vpop.f32.mrf.mxu1 }
 0x1b6   :  { %v254_v41 = vmax.f32 %v249_v39, 0.0 }
 0x1b7   :  { %v251_v42 = vpop.f32.mrf.mxu1 }
 0x1b8   :  { %v255_v43 = vpack.c.bf16 %v254_v41, %v254_v41 }
 0x1b9   :  { %v576_v44 = vpop.f32.mrf.mxu1 }
 0x1ba   :  { %594 = vmatmul.mubr.bf16.vlgmr.msra.gmra.mxu0 %v255_v43 }
 0x27a   :  { %v359_v49 = vpop.f32.mrf.mxu0 }
 0x27b   :  { %v360_v50 = vadd.f32 %v359_v49, %v276_v48 }
 0x27c   :  { %v595_v51 = vpop.f32.mrf.mxu0 }
 0x27d   :  { %v365_v52 = vmax.f32 %v360_v50, 0.0 }
 0x27e   :  { %v362_v53 = vpop.f32.mrf.mxu0 }
 0x27f   :  { %v366_v54 = vpack.c.bf16 %v365_v52, %v365_v52 }
 0x280   :  { %v596_v55 = vpop.f32.mrf.mxu0 }
 0x281   :  { %614 = vmatmul.mubr.bf16.vlgmr.msra.gmra.mxu1 %v366_v54 }
 0x341   :  { %v470_v58 = vpop.f32.mrf.mxu1 }
 0x342   :  { %v471_v59 = vadd.f32 %v470_v58, %v387_v57 }
 0x343   :  { %v615_v60 = vpop.f32.mrf.mxu1 }
 0x344   :  { %477 = vst.msk [vmem:[#allocation8] sm:$0xff] %vm476_vm3, %v471_v59 }
 0x345   :  { %v473_v61 = vpop.f32.mrf.mxu1 }
 0x346   :  { %722 = shalt.err (!%p719_p5)
}
 0x347   :  { %487 = dma.vmem_to_hbm [thread:$0]  %s485_s7, 128, %s825_s4, [#allocation4]   ;;  %v616_v62 = vpop.f32.mrf.mxu1 }
 0x348   :  { %735 = dma.done.wait [#allocation4], 128  }
 0x349   :  { %736 = vsyncadd [#allocation4], 4294967168 }
 0x34a   :  { %491 = vsyncpa [#allocation3], 1 }
 0x34b   :  { %492 = vsyncpa [#allocation6], 1 }
 0x34c   :  { %493 = vsyncpa [#allocation4], 1 }

</bundles_post_ra>
